<compile_context>
chip_gen: v7x
topology: tpu7x:2x2x1
jax: 0.10.0
libtpu: 0.0.40
codegen_flags: <defaults>
</compile_context>

<pallas_src>
import jax
import jax.numpy as jnp
from jax.experimental import pallas as pl
from jax.experimental.pallas import tpu as pltpu


def _pick_tile(total, target, quantum=128):
    """Largest multiple of `quantum` that divides `total` and is <= target.

    Falls back to `total` (full-dim block, always legal) if none exists.
    """
    target = max(quantum, min(total, target))
    t = (target // quantum) * quantum
    while t >= quantum:
        if total % t == 0:
            return t
        t -= quantum
    return total


def _vmem_limit(bytes_est):
    # estimated live bytes + headroom, clamped to a range safe on v5e/v6e/v7x.
    return int(min(64 << 20, max(bytes_est + (4 << 20), 16 << 20)))


def _convt_stats_kernel(x_ref, w_ref, b_ref, y_ref, sum_ref, ssq_ref):
    # x_ref: (Cin, tw)   w_ref: (K, Cin)   b_ref: (K, 1)
    # y_ref: (K, tw)     sum_ref/ssq_ref: (K, 1) accumulators (resident over t)
    y = jnp.dot(w_ref[...], x_ref[...],
                preferred_element_type=jnp.float32) + b_ref[...]
    y_ref[...] = y
    s = jnp.sum(y, axis=1, keepdims=True)        # (K, 1)
    ss = jnp.sum(y * y, axis=1, keepdims=True)   # (K, 1)

    @pl.when(pl.program_id(1) == 0)
    def _init():
        sum_ref[...] = s
        ssq_ref[...] = ss

    @pl.when(pl.program_id(1) != 0)
    def _acc():
        sum_ref[...] = sum_ref[...] + s
        ssq_ref[...] = ssq_ref[...] + ss


def _norm_relu_kernel(y_ref, scale_ref, shift_ref, o_ref):
    # y_ref/o_ref: (K, tw)   scale_ref/shift_ref: (K, 1) broadcast over lanes.
    o_ref[...] = jnp.maximum(y_ref[...] * scale_ref[...] + shift_ref[...], 0.0)


def up_sampling_forward(x_nchw, weight, bias, *, kernel_size, stride, padding,
                        eps=1e-5):
    """Forward of Up_Sampling.

    x_nchw: (N, Cin, H, W) float32
    weight: (Cin, Cout, kH, kW)  (PyTorch ConvTranspose2d layout)
    bias:   (Cout,)
    Returns (N, Cout, H*stride, W*stride) float32.
    """
    # TODO(synk): general overlapping transposed conv (kernel_size != stride or
    # padding != 0) needs a scatter-accumulate; this kernel covers the standard
    # non-overlapping up-sampling configuration.
    assert kernel_size == stride and padding == 0, (
        "kernel covers kernel_size == stride, padding == 0")

    N, Cin, H, W = x_nchw.shape
    Cin_w, Cout, kH, kW = weight.shape
    assert Cin == Cin_w
    HWin = H * W
    K = kH * kW * Cout
    Hout, Wout = H * stride, W * stride

    # --- glue (cheap / free reshapes) ----------------------------------------
    x_flat = x_nchw.reshape(N, Cin, HWin)                       # free (row-major)
    # (Cin, Cout, kH, kW) -> (kH, kW, Cout, Cin) -> (K, Cin); K = (kh,kw,cout)
    w_flat = jnp.transpose(weight, (2, 3, 1, 0)).reshape(K, Cin)
    b_col = jnp.tile(bias, kH * kW).reshape(K, 1)

    # --- kernel 1: tiled matmul + bias, fused InstanceNorm statistics ---------
    tw1 = _pick_tile(HWin, max(128, (2 << 20) // max(1, (Cin + K) * 4)))
    grid1 = (N, HWin // tw1)
    vmem1 = _vmem_limit(2 * (Cin + K) * tw1 * 4 + 2 * (K * Cin + 3 * K) * 4)

    y_flat, sum_k, ssq_k = pl.pallas_call(
        _convt_stats_kernel,
        out_shape=(
            jax.ShapeDtypeStruct((N, K, HWin), jnp.float32),
            jax.ShapeDtypeStruct((N, K, 1), jnp.float32),
            jax.ShapeDtypeStruct((N, K, 1), jnp.float32),
        ),
        grid=grid1,
        in_specs=[
            pl.BlockSpec((None, Cin, tw1), lambda n, t: (n, 0, t)),
            pl.BlockSpec((K, Cin), lambda n, t: (0, 0)),   # resident weights
            pl.BlockSpec((K, 1), lambda n, t: (0, 0)),     # resident bias
        ],
        out_specs=(
            pl.BlockSpec((None, K, tw1), lambda n, t: (n, 0, t)),
            pl.BlockSpec((None, K, 1), lambda n, t: (n, 0, 0)),  # accumulator
            pl.BlockSpec((None, K, 1), lambda n, t: (n, 0, 0)),  # accumulator
        ),
        compiler_params=pltpu.CompilerParams(
            dimension_semantics=("parallel", "arbitrary"),
            vmem_limit_bytes=vmem1),
    )(x_flat, w_flat, b_col)

    # --- tiny per-channel statistics (N*K elements) in plain JAX --------------
    count = float(HWin * kH * kW)                       # == Hout * Wout
    s_c = jnp.sum(sum_k.reshape(N, kH * kW, Cout), axis=1)    # (N, Cout)
    ss_c = jnp.sum(ssq_k.reshape(N, kH * kW, Cout), axis=1)   # (N, Cout)
    mean = s_c / count
    var = jnp.maximum(ss_c / count - mean * mean, 0.0)
    inv = jax.lax.rsqrt(var + eps)                            # (N, Cout)
    scale_k = jnp.tile(inv, (1, kH * kW)).reshape(N, K, 1)
    shift_k = jnp.tile(-mean * inv, (1, kH * kW)).reshape(N, K, 1)

    # --- kernel 2: fused normalize + ReLU (tiled, lane-dense output) ----------
    tw2 = _pick_tile(HWin, max(128, (2 << 20) // max(1, 2 * K * 4)))
    grid2 = (N, HWin // tw2)
    vmem2 = _vmem_limit(2 * 2 * K * tw2 * 4 + 4 * K * 4)

    out_flat = pl.pallas_call(
        _norm_relu_kernel,
        out_shape=jax.ShapeDtypeStruct((N, K, HWin), jnp.float32),
        grid=grid2,
        in_specs=[
            pl.BlockSpec((None, K, tw2), lambda n, t: (n, 0, t)),
            pl.BlockSpec((None, K, 1), lambda n, t: (n, 0, 0)),  # resident
            pl.BlockSpec((None, K, 1), lambda n, t: (n, 0, 0)),  # resident
        ],
        out_specs=pl.BlockSpec((None, K, tw2), lambda n, t: (n, 0, t)),
        compiler_params=pltpu.CompilerParams(
            dimension_semantics=("parallel", "parallel"),
            vmem_limit_bytes=vmem2),
    )(y_flat, scale_k, shift_k)

    # --- single combined layout pass: tap interleave + (already) channel-major
    # out_flat[n, (kh,kw,co), (h,w)] -> out[n, co, h*kH+kh, w*kW+kw]
    out = out_flat.reshape(N, kH, kW, Cout, H, W)
    out = jnp.transpose(out, (0, 3, 4, 1, 5, 2)).reshape(N, Cout, Hout, Wout)
    return out


if __name__ == "__main__":
    key = jax.random.PRNGKey(0)
    N, Cin, Cout, H, W = 2, 4, 8, 16, 16
    k, s, p = 2, 2, 0  # non-overlapping 2x up-sample

    kx, kw_, kb = jax.random.split(key, 3)
    x = jax.random.normal(kx, (N, Cin, H, W), jnp.float32)
    # Deterministic synthetic init (PyTorch ConvTranspose2d weight layout).
    bound = 1.0 / float(Cin * k * k) ** 0.5
    weight = jax.random.uniform(kw_, (Cin, Cout, k, k), jnp.float32, -bound, bound)
    bias = jax.random.uniform(kb, (Cout,), jnp.float32, -bound, bound)

    out = up_sampling_forward(x, weight, bias, kernel_size=k, stride=s, padding=p)
    out = jax.block_until_ready(out)
    assert out.shape == (N, Cout, H * s, W * s)

    # Pure-JAX reference for correctness.
    x_nhwc = jnp.transpose(x, (0, 2, 3, 1))
    y_ref = jnp.einsum('nhwi,iokl->nhkwlo', x_nhwc, weight).reshape(
        N, H * k, W * k, Cout) + bias
    mean = jnp.mean(y_ref, axis=(1, 2), keepdims=True)
    var = jnp.var(y_ref, axis=(1, 2), keepdims=True)
    ref = jnp.maximum((y_ref - mean) / jnp.sqrt(var + 1e-5), 0.0)
    ref = jnp.transpose(ref, (0, 3, 1, 2))
    err = float(jnp.max(jnp.abs(out - ref)))
    assert jnp.allclose(out, ref, atol=1e-4, rtol=1e-4), err

    print("KERNEL_OK")
</pallas_src>

<mosaic_0001>
module attributes {stable_mosaic.version = 11 : i64} {
  func.func @_convt_stats_kernel(%arg0: i32, %arg1: i32, %arg2: memref<1x4x256xf32, #tpu.memory_space<vmem>>, %arg3: memref<32x4xf32, #tpu.memory_space<vmem>>, %arg4: memref<32x1xf32, #tpu.memory_space<vmem>>, %arg5: memref<1x32x256xf32, #tpu.memory_space<vmem>>, %arg6: memref<1x32x1xf32, #tpu.memory_space<vmem>>, %arg7: memref<1x32x1xf32, #tpu.memory_space<vmem>>) attributes {dimension_semantics = [#tpu.dimension_semantics<parallel>, #tpu.dimension_semantics<arbitrary>], iteration_bounds = array<i64: 2, 1>, scalar_prefetch = 0 : i64, scratch_operands = 0 : i64, tpu.core_type = #tpu.core_type<tc>, window_params = [{transform_indices = @transform_0, window_bounds = array<i64: 1, 4, 256>}, {pipeline_mode = #tpu.pipeline_mode<synchronous>, transform_indices = @transform_1, window_bounds = array<i64: 32, 4>}, {pipeline_mode = #tpu.pipeline_mode<synchronous>, transform_indices = @transform_2, window_bounds = array<i64: 32, 1>}, {transform_indices = @transform_3, window_bounds = array<i64: 1, 32, 256>}, {transform_indices = @transform_4, window_bounds = array<i64: 1, 32, 1>}, {transform_indices = @transform_5, window_bounds = array<i64: 1, 32, 1>}]} {
    %c0 = arith.constant 0 : index
    %c0_0 = arith.constant 0 : index
    %0 = vector.load %arg3[%c0, %c0_0] : memref<32x4xf32, #tpu.memory_space<vmem>>, vector<32x4xf32>
    %c0_1 = arith.constant 0 : index
    %c0_2 = arith.constant 0 : index
    %c0_3 = arith.constant 0 : index
    %1 = vector.load %arg2[%c0_1, %c0_2, %c0_3] : memref<1x4x256xf32, #tpu.memory_space<vmem>>, vector<1x4x256xf32>
    %2 = vector.shape_cast %1 : vector<1x4x256xf32> to vector<4x256xf32>
    %cst = arith.constant dense<0.000000e+00> : vector<32x256xf32>
    %3 = tpu.matmul %0, %2, %cst {dimension_numbers = #tpu.dot_dimension_numbers<[1], [0], [0], [1], [0, 0, 1, 1], [], []>} : vector<32x4xf32>, vector<4x256xf32>, vector<32x256xf32> -> vector<32x256xf32>
    %c0_4 = arith.constant 0 : index
    %c0_5 = arith.constant 0 : index
    %4 = vector.load %arg4[%c0_4, %c0_5] : memref<32x1xf32, #tpu.memory_space<vmem>>, vector<32x1xf32>
    %5 = vector.broadcast %4 : vector<32x1xf32> to vector<32x256xf32>
    %6 = arith.addf %3, %5 : vector<32x256xf32>
    %c0_6 = arith.constant 0 : index
    %c0_7 = arith.constant 0 : index
    %c0_8 = arith.constant 0 : index
    %7 = vector.load %arg5[%c0_6, %c0_7, %c0_8] : memref<1x32x256xf32, #tpu.memory_space<vmem>>, vector<1x32x256xf32>
    %8 = vector.shape_cast %7 : vector<1x32x256xf32> to vector<32x256xf32>
    %9 = vector.shape_cast %6 : vector<32x256xf32> to vector<1x32x256xf32>
    tpu.vector_store %arg5[%c0_6, %c0_7, %c0_8], %9 {strides = array<i32>} : memref<1x32x256xf32, #tpu.memory_space<vmem>>, vector<1x32x256xf32>,
    %cst_9 = arith.constant dense<0.000000e+00> : vector<32xf32>
    %10 = vector.multi_reduction <add>, %6, %cst_9 [1] : vector<32x256xf32> to vector<32xf32>
    %11 = vector.shape_cast %10 : vector<32xf32> to vector<32x1xf32>
    %12 = arith.mulf %6, %6 : vector<32x256xf32>
    %cst_10 = arith.constant dense<0.000000e+00> : vector<32xf32>
    %13 = vector.multi_reduction <add>, %12, %cst_10 [1] : vector<32x256xf32> to vector<32xf32>
    %14 = vector.shape_cast %13 : vector<32xf32> to vector<32x1xf32>
    %c0_i32 = arith.constant 0 : i32
    %15 = arith.cmpi eq, %arg1, %c0_i32 : i32
    %16 = arith.extui %15 : i1 to i32
    %c0_i32_11 = arith.constant 0 : i32
    %17 = arith.cmpi ne, %16, %c0_i32_11 : i32
    scf.if %17 {
      %c0_14 = arith.constant 0 : index
      %c0_15 = arith.constant 0 : index
      %c0_16 = arith.constant 0 : index
      %21 = vector.load %arg6[%c0_14, %c0_15, %c0_16] : memref<1x32x1xf32, #tpu.memory_space<vmem>>, vector<1x32x1xf32>
      %22 = vector.shape_cast %21 : vector<1x32x1xf32> to vector<32x1xf32>
      %23 = vector.shape_cast %11 : vector<32x1xf32> to vector<1x32x1xf32>
      tpu.vector_store %arg6[%c0_14, %c0_15, %c0_16], %23 {strides = array<i32>} : memref<1x32x1xf32, #tpu.memory_space<vmem>>, vector<1x32x1xf32>,
      %c0_17 = arith.constant 0 : index
      %c0_18 = arith.constant 0 : index
      %c0_19 = arith.constant 0 : index
      %24 = vector.load %arg7[%c0_17, %c0_18, %c0_19] : memref<1x32x1xf32, #tpu.memory_space<vmem>>, vector<1x32x1xf32>
      %25 = vector.shape_cast %24 : vector<1x32x1xf32> to vector<32x1xf32>
      %26 = vector.shape_cast %14 : vector<32x1xf32> to vector<1x32x1xf32>
      tpu.vector_store %arg7[%c0_17, %c0_18, %c0_19], %26 {strides = array<i32>} : memref<1x32x1xf32, #tpu.memory_space<vmem>>, vector<1x32x1xf32>,
    } else {
    }
    %c0_i32_12 = arith.constant 0 : i32
    %18 = arith.cmpi ne, %arg1, %c0_i32_12 : i32
    %19 = arith.extui %18 : i1 to i32
    %c0_i32_13 = arith.constant 0 : i32
    %20 = arith.cmpi ne, %19, %c0_i32_13 : i32
    scf.if %20 {
      %c0_14 = arith.constant 0 : index
      %c0_15 = arith.constant 0 : index
      %c0_16 = arith.constant 0 : index
      %21 = vector.load %arg6[%c0_14, %c0_15, %c0_16] : memref<1x32x1xf32, #tpu.memory_space<vmem>>, vector<1x32x1xf32>
      %22 = vector.shape_cast %21 : vector<1x32x1xf32> to vector<32x1xf32>
      %23 = arith.addf %22, %11 : vector<32x1xf32>
      %c0_17 = arith.constant 0 : index
      %c0_18 = arith.constant 0 : index
      %c0_19 = arith.constant 0 : index
      %24 = vector.load %arg6[%c0_17, %c0_18, %c0_19] : memref<1x32x1xf32, #tpu.memory_space<vmem>>, vector<1x32x1xf32>
      %25 = vector.shape_cast %24 : vector<1x32x1xf32> to vector<32x1xf32>
      %26 = vector.shape_cast %23 : vector<32x1xf32> to vector<1x32x1xf32>
      tpu.vector_store %arg6[%c0_17, %c0_18, %c0_19], %26 {strides = array<i32>} : memref<1x32x1xf32, #tpu.memory_space<vmem>>, vector<1x32x1xf32>,
      %c0_20 = arith.constant 0 : index
      %c0_21 = arith.constant 0 : index
      %c0_22 = arith.constant 0 : index
      %27 = vector.load %arg7[%c0_20, %c0_21, %c0_22] : memref<1x32x1xf32, #tpu.memory_space<vmem>>, vector<1x32x1xf32>
      %28 = vector.shape_cast %27 : vector<1x32x1xf32> to vector<32x1xf32>
      %29 = arith.addf %28, %14 : vector<32x1xf32>
      %c0_23 = arith.constant 0 : index
      %c0_24 = arith.constant 0 : index
      %c0_25 = arith.constant 0 : index
      %30 = vector.load %arg7[%c0_23, %c0_24, %c0_25] : memref<1x32x1xf32, #tpu.memory_space<vmem>>, vector<1x32x1xf32>
      %31 = vector.shape_cast %30 : vector<1x32x1xf32> to vector<32x1xf32>
      %32 = vector.shape_cast %29 : vector<32x1xf32> to vector<1x32x1xf32>
      tpu.vector_store %arg7[%c0_23, %c0_24, %c0_25], %32 {strides = array<i32>} : memref<1x32x1xf32, #tpu.memory_space<vmem>>, vector<1x32x1xf32>,
    } else {
    }
    return
  }
  func.func @transform_0(%arg0: i32, %arg1: i32) -> (i32, i32, i32) {
    %c0_i32 = arith.constant 0 : i32
    %c0_i32_0 = arith.constant 0 : i32
    return %arg0, %c0_i32, %arg1 : i32, i32, i32
  }
  func.func @transform_1(%arg0: i32, %arg1: i32) -> (i32, i32) {
    %c0_i32 = arith.constant 0 : i32
    %c0_i32_0 = arith.constant 0 : i32
    %c0_i32_1 = arith.constant 0 : i32
    return %c0_i32, %c0_i32_0 : i32, i32
  }
  func.func @transform_2(%arg0: i32, %arg1: i32) -> (i32, i32) {
    %c0_i32 = arith.constant 0 : i32
    %c0_i32_0 = arith.constant 0 : i32
    %c0_i32_1 = arith.constant 0 : i32
    return %c0_i32, %c0_i32_0 : i32, i32
  }
  func.func @transform_3(%arg0: i32, %arg1: i32) -> (i32, i32, i32) {
    %c0_i32 = arith.constant 0 : i32
    %c0_i32_0 = arith.constant 0 : i32
    return %arg0, %c0_i32, %arg1 : i32, i32, i32
  }
  func.func @transform_4(%arg0: i32, %arg1: i32) -> (i32, i32, i32) {
    %c0_i32 = arith.constant 0 : i32
    %c0_i32_0 = arith.constant 0 : i32
    %c0_i32_1 = arith.constant 0 : i32
    return %arg0, %c0_i32, %c0_i32_0 : i32, i32, i32
  }
  func.func @transform_5(%arg0: i32, %arg1: i32) -> (i32, i32, i32) {
    %c0_i32 = arith.constant 0 : i32
    %c0_i32_0 = arith.constant 0 : i32
    %c0_i32_1 = arith.constant 0 : i32
    return %arg0, %c0_i32, %c0_i32_0 : i32, i32, i32
  }
}

</mosaic_0001>

<bundles_post_ra>
// kernel: tpu_custom_call.1
= control target key start
LH: loop header
LB: loop body
LE: loop exit
PB: predicated region body
PF: predicated region fallthrough
CT: control target
= control target key end

     0   :  { %11 = vsyncpa [#allocation3], 0  ;;  %s1038_s0 = inlined_call_operand.vmem [shape: f32[2,4,256], index: 0, kind: input, shape index: {}]   ;;  %s1039_s1 = inlined_call_operand.vmem [shape: f32[32,4], index: 1, kind: input, shape index: {}]   ;;  %s1040_s2 = inlined_call_operand.vmem [shape: f32[32,1], index: 2, kind: input, shape index: {}]   ;;  %s1041_s3 = inlined_call_operand.hbm [shape: f32[2,32,256], index: 3, kind: output, shape index: {0}]   ;;  %s1042_s4 = inlined_call_operand.vmem [shape: f32[2,32,1], index: 4, kind: output, shape index: {1}]   ;;  %s1043_s5 = inlined_call_operand.vmem [shape: f32[2,32,1], index: 5, kind: output, shape index: {2}]  }
   0x1   :  { %13 = vsyncpa [#allocation3 + $0x1], 0  ;;  %s866_s18 = smov 0   ;;  %s868_s19 = smov 0  }
   0x2   :  { %s870_s20 = smov 0   ;;  %s872_s21 = smov 0  }
   0x3   :  { %s874_s22 = smov 0   ;;  %s876_s23 = smov 0  }
   0x4 LB: > { %s660_s24 = sadd.s32 4294967295, %s829_s23   ;;  %s661_s25 = sadd.s32 4294967294, %s829_s23   ;;  %s829_s23 = sphi %s876_s23, %s19_s23   ;;  %s825_s22 = sphi %s874_s22, %s1050_s22   ;;  %s821_s21 = sphi %s872_s21, %s1049_s21   ;;  %s817_s20 = sphi %s870_s20, %s1048_s20   ;;  %s813_s19 = sphi %s868_s19, %s1047_s19   ;;  %s809_s18 = sphi %s866_s18, %s1046_s18  }
   0x5   : > { %s31_s26 = sadd.s32 1, %s825_s22  ;;  %s110_s27 = sadd.s32 1, %s817_s20 }
   0x6   : > { %p33_p0 = scmp.ge.s32.totalorder %s31_s26, 2  ;;  %p120_p1 = scmp.ne.s32.totalorder %s817_s20, %s813_s19 }
   0x7   : > { %p121_p2 = scmp.eq.s32.totalorder %s660_s24, 1  ;;  %p126_p3 = scmp.ne.s32.totalorder %s813_s19, %s809_s18 }
   0x8   : > { %s1052_s26 = smov (%p33_p0, %s31_s26), 0  ;;  %p127_p5 = scmp.eq.s32.totalorder %s661_s25, 1 }
   0x9   : > { %p906_p4 = por %p121_p2, %p120_p1  ;;  %s105_s29 = ssub.s32 %s825_s22, %s1052_s26 }
   0xa   : > { %p664_p6 = scmp.ge.s32.totalorder %s829_s23, 1  ;;  %p108_p7 = scmp.eq.s32.totalorder %s105_s29, 0 }
   0xb   : > { %p913_p8 = por %p127_p5, %p126_p3  ;;  %p216_p9 = scmp.lt.s32.totalorder %s829_s23, 3 }
   0xc   : > { %s919_s6 = scalar_select %p108_p7, %s817_s20, %s110_s27  }
   0xd   : > { %p217_p10 = pnand %p664_p6, %p216_p9 }
   0xe   : > { %p259_p11 = scmp.lt.s32.totalorder (!%p217_p10), %s821_s21, 1  ;;  %v831_v0 = vmov (!%p217_p10), 0.0   ;;  %v284_v1 = vld [vmem:[%s1040_s2] sm:$0xff] (!%p217_p10)  ;;  %v832_v2 = vmov (!%p217_p10), 0   ;;  %v286_v3 = vld [vmem:[%s1040_s2 + $0x10] sm:$0xff] (!%p217_p10)  ;;  %v285_v4 = vld [vmem:[%s1040_s2 + $0x8] sm:$0xff] (!%p217_p10) }
   0xf   : > { %220 = sbr.rel (%p217_p10) target bundleno = 407 (0x197), region = 32  ;;  %392 = vmatprep.mubr.f32.mxu0 (!%p217_p10), %v831_v0  ;;  %404 = vmatprep.mubr.f32.mxu1 (!%p217_p10), %v831_v0  ;;  %v287_v5 = vld [vmem:[%s1040_s2 + $0x18] sm:$0xff] (!%p217_p10)  ;;  %vm323_vm0 = vcmask (!%p217_p10), 1043456   ;;  %v279_v8 = vld [vmem:[%s1039_s1] sm:$0xff] (!%p217_p10)  ;;  %vm310_vm1 = vcmask (!%p217_p10), 31744   ;;  %v281_v9 = vld [vmem:[%s1039_s1 + $0x10] sm:$0xff] (!%p217_p10) }
  0x10   : > { %748 = vset.pattern.permute.xlu0 (!%p217_p10), %v832_v2  ;;  %749 = vset.pattern.permute.xlu1 (!%p217_p10), %v832_v2  ;;  %v280_v10 = vld [vmem:[%s1039_s1 + $0x8] sm:$0xff] (!%p217_p10)  ;;  %v282_v11 = vld [vmem:[%s1039_s1 + $0x18] sm:$0xff] (!%p217_p10)  ;;  %s241_s14 = sand.u32 (!%p217_p10), 1, %s813_s19   ;;  %s686_s17 = sshll.u32 (!%p217_p10), %s821_s21, 10 }
  0x11   : > { %290 = vperm.xlu0 (!%p217_p10), %748, %v284_v1   ;;  %300 = vperm.xlu1 (!%p217_p10), %749, %v286_v3   ;;  %s665_s15 = sshll.u32 (!%p217_p10), %s241_s14, 6  ;;  %s971_s29 = scalar_lea.hbm (!%p217_p10), %s1041_s3, %s686_s17 }
  0x12   : > { %s956_s16 = scalar_lea.vmem (!%p217_p10), [#allocation2], %s665_s15  ;;  %s977_s7 = scalar_lea.sflag (!%p217_p10), [#allocation3], %s241_s14 }
  0x13   : > { %s525_s24 = sshll.u32 (!%p217_p10), %s956_s16, 4  ;;  %s973_s24 = int_to_ptr.vmem [resolvable:$true] %s525_s24 }
  0x14   : > { %s751_s8 = scalar_lea.vmem (!%p217_p10), %s973_s24, 1024 }
  0x15   : > { %295 = vperm.xlu0 (!%p217_p10), %748, %v285_v4   ;;  %305 = vperm.xlu1 (!%p217_p10), %749, %v287_v5   ;;  %p752_p12 = scmp.ne.s32.totalorder (!%p217_p10), %s973_s24, %s751_s8 }
  0x16   : > { %s926_s9 = scalar_select %p259_p11, %s821_s21, 1 }
  0x17   : > { %p753_p13 = pnand %p752_p12, %p906_p4  ;;  %s833_s21 = smov [#allocation2]  }
  0x18   : > { %s683_s12 = sshll.u32 %s926_s9, 3  ;;  %s755_s10 = sshll.u32 %s833_s21, 4  ;;  %s756_s10 = int_to_ptr.vmem [resolvable:$false] %s755_s10 }
  0x19   : > { %s266_s25 = scalar_lea.vmem %s1038_s0, %s683_s12  ;;  %p754_p0 = pneg %p753_p13 }
  0x1a   : > { %v283_v6 = vld [vmem:[%s266_s25] sm:$0xff]  ;;  %s757_s11 = scalar_lea.vmem %s756_s10, 2048  ;;  %p758_p1 = scmp.lt.s32.totalorder %s973_s24, %s756_s10 }
  0x1b   : > { %v309_v7 = vcombine.high %v283_v6, %v283_v6  ;;  %p759_p2 = scmp.lt.s32.totalorder %s757_s11, %s751_s8 }
  0x1d   : > { %672 = vmatprep.subr.msk.mxu0 %vm323_vm0, %v309_v7  ;;  %687 = vmatprep.subr.msk.mxu1 %vm323_vm0, %v309_v7  ;;  %p760_p3 = por %p759_p2, %p758_p1 }
  0x1e   : > { %673 = vmatpush1.msk.msra.mxu0 %vm323_vm0, %v283_v6  ;;  %688 = vmatpush1.msk.msra.mxu1 %vm323_vm0, %v283_v6 }
  0x1f   : > { %674 = vmatmul.mubr.msk.f32.vlgmr.msra.gmra.mrb[0].mxu0 %vm310_vm1, %v279_v8  ;;  %676 = vmatmul.mubr.msk.f32.vlgmr.msra.gmra.mrb[0].mxu1 %vm310_vm1, %v281_v9  ;;  %p761_p5 = pnand %p760_p3, %p754_p0 }
  0x20   : > { %398 = vmatprep.mubr.f32.mxu0 %v831_v0  ;;  %410 = vmatprep.mubr.f32.mxu1 %v831_v0 }
  0x23   : > { %675 = vmatmul.mubr.msk.f32.gmra.mrb[2].mxu0 %vm310_vm1, %v280_v10  ;;  %677 = vmatmul.mubr.msk.f32.gmra.mrb[2].mxu1 %vm310_vm1, %v282_v11 }
  0x90   : > { %v301_v12 = vpop.permute.xlu1 %300  ;;  %v291_v13 = vpop.permute.xlu0 %290 }
  0x94   : > { %v306_v22 = vpop.permute.xlu1 %305  ;;  %v296_v23 = vpop.permute.xlu0 %295 }
  0xf2   : > { %v394_v14 = vpop.f32.mrb[0].mxu0  ;;  %v406_v15 = vpop.f32.mrb[0].mxu1 }
  0xf3   : > { %v395_v16 = vadd.f32 %v394_v14, %v291_v13  ;;  %v396_v17 = vpop.f32.mrb[1].mxu0  ;;  %v407_v18 = vadd.f32 %v406_v15, %v301_v12  ;;  %v408_v19 = vpop.f32.mrb[1].mxu1 }
  0xf4   : > { %v397_v20 = vadd.f32 %v396_v17, %v291_v13  ;;  %v409_v21 = vadd.f32 %v408_v19, %v301_v12 }
  0xf5   : > { %417 = vst [vmem:[%s956_s16] sm:$0xff] %v395_v16  ;;  %421 = vst [vmem:[%s956_s16 + $0x20] sm:$0xff] %v407_v18  ;;  %v437_v24 = vmul.f32 %v395_v16, %v395_v16  ;;  %v441_v25 = vmul.f32 %v407_v18, %v407_v18 }
  0xf6   : > { %418 = vst [vmem:[%s956_s16 + $0x8] sm:$0xff] %v397_v20  ;;  %422 = vst [vmem:[%s956_s16 + $0x28] sm:$0xff] %v409_v21  ;;  %v400_v26 = vpop.f32.mrb[2].mxu0  ;;  %v412_v27 = vpop.f32.mrb[2].mxu1  ;;  %v425_v28 = vadd.f32 %v397_v20, %v395_v16  ;;  %v438_v29 = vmul.f32 %v397_v20, %v397_v20  ;;  %v431_v30 = vadd.f32 %v409_v21, %v407_v18 }
  0xf7   : > { %v442_v31 = vmul.f32 %v409_v21, %v409_v21  ;;  %v401_v32 = vadd.f32 %v400_v26, %v296_v23  ;;  %v413_v33 = vadd.f32 %v412_v27, %v306_v22  ;;  %v402_v34 = vpop.f32.mrb[3].mxu0  ;;  %v414_v35 = vpop.f32.mrb[3].mxu1 }
  0xf8   : > { %v403_v36 = vadd.f32 %v402_v34, %v296_v23  ;;  %v415_v37 = vadd.f32 %v414_v35, %v306_v22  ;;  %426 = vadd.xlane.f32.xlu0 %v425_v28  ;;  %v445_v38 = vadd.f32 %v438_v29, %v437_v24 }
  0xf9   : > { %v451_v39 = vadd.f32 %v442_v31, %v441_v25  ;;  %419 = vst [vmem:[%s956_s16 + $0x10] sm:$0xff] %v401_v32  ;;  %423 = vst [vmem:[%s956_s16 + $0x30] sm:$0xff] %v413_v33  ;;  %v439_v40 = vmul.f32 %v401_v32, %v401_v32  ;;  %v443_v41 = vmul.f32 %v413_v33, %v413_v33 }
  0xfa   : > { %420 = vst [vmem:[%s956_s16 + $0x18] sm:$0xff] %v403_v36  ;;  %424 = vst [vmem:[%s956_s16 + $0x38] sm:$0xff] %v415_v37  ;;  %446 = vadd.xlane.f32.xlu1 %v445_v38  ;;  %v428_v42 = vadd.f32 %v403_v36, %v401_v32  ;;  %v434_v43 = vadd.f32 %v415_v37, %v413_v33  ;;  %v440_v44 = vmul.f32 %v403_v36, %v403_v36 }
  0xfb   : > { %v444_v45 = vmul.f32 %v415_v37, %v415_v37 }
  0xfc   : > { %432 = vadd.xlane.f32.xlu0 %v431_v30  ;;  %v448_v46 = vadd.f32 %v440_v44, %v439_v40 }
  0xfd   : > { %v454_v47 = vadd.f32 %v444_v45, %v443_v41 }
  0xfe   : > { %429 = vadd.xlane.f32.xlu1 %v428_v42 }
 0x100   : > { %435 = vadd.xlane.f32.xlu0 %v434_v43 }
 0x102   : > { %452 = vadd.xlane.f32.xlu1 %v451_v39 }
 0x104   : > { %449 = vadd.xlane.f32.xlu0 %v448_v46 }
 0x108   : > { %455 = vadd.xlane.f32.xlu0 %v454_v47 }
 0x109   : > { %764 = shalt.err (!%p761_p5)
}
 0x10a   : > { %s765_s12 = scalar_lea.hbm %s971_s29, 1024  ;;  %s769_s15 = scalar_lea.hbm %s1041_s3, 2048 }
 0x10b   : > { %p766_p6 = scmp.ne.s32.totalorder %s971_s29, %s765_s12  ;;  %p770_p10 = scmp.lt.u32.totalorder %s971_s29, %s1041_s3 }
 0x10c   : > { %p771_p11 = scmp.lt.u32.totalorder %s769_s15, %s765_s12  ;;  %p773_p13 = scmp.lt.u32.totalorder %s765_s12, %s971_s29 }
 0x10d   : > { %p767_p7 = pnand %p766_p6, %p906_p4 }
 0x10e   : > { %p772_p12 = por %p771_p11, %p770_p10 }
 0x10f   : > { %p768_p9 = pneg %p767_p7 }
 0x110   : > { %p774_p0 = por %p773_p13, %p772_p12 }
 0x112   : > { %p775_p1 = pnand %p774_p0, %p768_p9 }
 0x114   : > { %778 = shalt.err (!%p775_p1)
}
 0x115   : > { %s834_s25 = smov 256   ;;  %s835_s27 = smov 16   ;;  %vm461_vm2 = vcmask 7168  }
 0x116   : > { %689 = dma.vmem_to_hbm [thread:$0]  (%p906_p4), %s973_s24, 1024, %s971_s29, %s977_s7, %s834_s25, %s834_s25, %s835_s27  }
 0x117   : > { %s684_s8 = sshll.u32 %s926_s9, 5 }
 0x118   : > { %s273_s11 = scalar_lea.vmem %s1042_s4, %s684_s8  ;;  %s278_s14 = scalar_lea.vmem %s1043_s5, %s684_s8 }
 0x185   : > { %v427_v48 = vpop.xlane.xlu0 %426 }
 0x186   : > { %462 = vst.msk [vmem:[%s273_s11] sm:$0xff] %vm461_vm2, %v427_v48 }
 0x187   : > { %v447_v49 = vpop.xlane.xlu1 %446 }
 0x188   : > { %466 = vst.msk [vmem:[%s278_s14] sm:$0xff] %vm461_vm2, %v447_v49 }
 0x189   : > { %v433_v50 = vpop.xlane.xlu0 %432 }
 0x18a   : > { %464 = vst.msk [vmem:[%s273_s11 + $0x10] sm:$0xff] %vm461_vm2, %v433_v50 }
 0x18b   : > { %v430_v51 = vpop.xlane.xlu1 %429 }
 0x18c   : > { %463 = vst.msk [vmem:[%s273_s11 + $0x8] sm:$0xff] %vm461_vm2, %v430_v51 }
 0x18d   : > { %v436_v52 = vpop.xlane.xlu0 %435 }
 0x18e   : > { %465 = vst.msk [vmem:[%s273_s11 + $0x18] sm:$0xff] %vm461_vm2, %v436_v52 }
 0x18f   : > { %v453_v53 = vpop.xlane.xlu1 %452 }
 0x190   : > { %468 = vst.msk [vmem:[%s278_s14 + $0x10] sm:$0xff] %vm461_vm2, %v453_v53 }
 0x191   : > { %v450_v54 = vpop.xlane.xlu0 %449 }
 0x192   : > { %467 = vst.msk [vmem:[%s278_s14 + $0x8] sm:$0xff] %vm461_vm2, %v450_v54 }
 0x195   : > { %v456_v55 = vpop.xlane.xlu0 %455 }
 0x196   : > { %469 = vst.msk [vmem:[%s278_s14 + $0x18] sm:$0xff] %vm461_vm2, %v456_v55 }
 0x197 PF: > { %p695_p4 = scmp.ge.s32.totalorder %s829_s23, 2  ;;  %s546_s28 = sand.u32 1, %s809_s18  }
 0x198   : > { %s547_s9 = scalar_lea.sflag [#allocation3], %s546_s28 }
 0x199   : > { %p692_p2 = pnand %p695_p4, %p913_p8 }
 0x19b   : > { %804 = dma.done.wait (!%p692_p2), %s547_s9, 1024  }
 0x19c   : > { %806 = vsyncadd (!%p692_p2), %s547_s9, 4294966272  ;;  %s19_s23 = sadd.s32 1, %s829_s23   ;;  %s1046_s18 = smov %s813_s19 }
 0x19d   : > { %p16_p3 = scmp.ge.s32.totalorder %s19_s23, 4   ;;  %s1047_s19 = smov %s817_s20 }
 0x19e   : > { %s1048_s20 = smov %s919_s6  ;;  %s1049_s21 = smov %s825_s22 }
 0x19f   : > { %s1050_s22 = smov %s1052_s26  ;;  %18 = sbr.rel (!%p16_p3) target bundleno = 4 (0x4), region = 99 }
 0x1a6   :  { %568 = vsyncpa [#allocation3], 1 }
 0x1a7   :  { %570 = vsyncpa [#allocation3 + $0x1], 1 }

</bundles_post_ra>
